<compile_context>
chip_gen: v5e
topology: v5e:2x2
jax: 0.10.0
libtpu: 0.0.40
codegen_flags: <defaults>
</compile_context>

<pallas_src>
import functools
import math

import jax
import jax.numpy as jnp
from jax import lax
from jax.experimental import pallas as pl
from jax.experimental.pallas import tpu as pltpu

_EPS = 1e-12  # F.normalize default eps


def _round_up(n, m):
    return ((n + m - 1) // m) * m


def _pad2d(a, rows, cols):
    r, c = a.shape
    if r == rows and c == cols:
        return a
    return jnp.pad(a, ((0, rows - r), (0, cols - c)))


def _fused_mlp_kernel(x_ref, *args, acts, has_l2norm, matmul_dtype, eps):
    """Fused GeneralMultiLayer stack for one row-block.

    args = (w_0, b_0, ..., w_{L-1}, b_{L-1}, o_ref).  Weights arrive pre-cast to
    `matmul_dtype`; every layer's output feature dim is zero-padded to a
    multiple of 128, so matmuls / ReLU / row sums-of-squares over padded lanes
    are exact (padded columns remain identically zero through every layer).
    """
    *wb_refs, o_ref = args
    num_layers = len(wb_refs) // 2

    h = x_ref[...]                                      # (rows, K0) matmul_dtype
    for i in range(num_layers):
        w = wb_refs[2 * i][...]                         # (K_i, Dp_i) matmul_dtype
        b = wb_refs[2 * i + 1][...]                     # (1, Dp_i)  f32
        # MXU matmul, f32 accumulation.
        y = jnp.dot(h.astype(matmul_dtype), w,
                    preferred_element_type=jnp.float32)
        y = y + b
        if acts[i]:
            y = jnp.maximum(y, 0.0)                     # ReLU
        if has_l2norm:
            # F.normalize(p=2, dim=1): y / max(||y||, eps)
            #   == y * rsqrt(max(||y||^2, eps^2))   (EUP rsqrt, no VPU divide)
            sq = jnp.sum(y * y, axis=1, keepdims=True)
            y = y * lax.rsqrt(jnp.maximum(sq, eps * eps))
        h = y
    o_ref[...] = h.astype(o_ref.dtype)


def _vmem_capacity_bytes():
    """Physical VMEM per TensorCore; conservative fallback if query fails."""
    try:
        cap = int(getattr(pltpu.get_tpu_info(), "vmem_capacity_bytes"))
        if cap > 0:
            return min(cap, 128 * 1024 * 1024)
    except Exception:
        pass
    return 64 * 1024 * 1024  # v7x-sized fallback (most constrained generation)


def general_multi_layer(x, params, *, final_act=True, has_l2norm=True,
                        matmul_dtype=jnp.bfloat16, out_dtype=jnp.float32,
                        block_rows_cap=1024, target_grid_steps=4):
    """GeneralMultiLayer.forward as a single fused pallas_call.

    params: list of (W, b) with W shaped (d_in, d_out) (already transposed vs.
    PyTorch's (d_out, d_in)) and b shaped (1, d_out).
    """
    n, d_in = x.shape
    num_layers = len(params)
    dims = [d_in] + [w.shape[1] for (w, _) in params]
    pout = [_round_up(d, 128) for d in dims[1:]]        # lane-dense output dims
    kdims = [d_in] + pout[:-1]                          # per-layer MXU K dims

    w_isz = jnp.dtype(matmul_dtype).itemsize
    x_isz = w_isz
    o_isz = jnp.dtype(out_dtype).itemsize

    # Resident (single-buffered) weights + f32 biases.
    weight_bytes = sum(kdims[i] * pout[i] * w_isz + pout[i] * 4
                       for i in range(num_layers))

    vmem_cap = _vmem_capacity_bytes()
    budget = int(0.75 * vmem_cap)
    max_feat = max([d_in] + pout)

    def tile_bytes(rows):
        return (2 * rows * d_in * x_isz            # double-buffered x tile
                + 2 * rows * pout[-1] * o_isz      # double-buffered out tile
                + 2 * rows * max_feat * 4)         # f32 intermediate h / scratch

    # Largest (8-aligned) row tile that fits the VMEM budget.
    rows = _round_up(min(block_rows_cap, _round_up(max(n, 8), 8)), 8)
    while rows > 8 and weight_bytes + tile_bytes(rows) > budget:
        rows -= 8
    # Keep >= target_grid_steps grid steps when N allows, so v7x's second
    # TensorCore gets work and the pipeline has something to overlap.
    rows_for_steps = _round_up(max(1, math.ceil(n / target_grid_steps)), 8)
    block_rows = max(8, min(rows, rows_for_steps))

    n_pad = _round_up(n, block_rows)
    grid = (n_pad // block_rows,)

    # Row-pad x if needed; no feature-axis pad (full last-dim block is legal).
    x_p = x if n_pad == n else jnp.pad(x, ((0, n_pad - n), (0, 0)))
    x_p = x_p.astype(matmul_dtype)

    # Pre-cast + pad weights (output dim -> 128-multiple; K dim of layer i>0 ->
    # previous layer's padded width). Biases stay f32 for an exact epilogue add.
    flat = []
    for i, (w, b) in enumerate(params):
        flat.append(_pad2d(w, kdims[i], pout[i]).astype(matmul_dtype))
        flat.append(_pad2d(b.reshape(1, -1), 1, pout[i]).astype(jnp.float32))

    acts = tuple((final_act if i == num_layers - 1 else True)
                 for i in range(num_layers))
    kernel = functools.partial(_fused_mlp_kernel, acts=acts,
                               has_l2norm=has_l2norm,
                               matmul_dtype=matmul_dtype, eps=_EPS)

    def build_specs(single_buffer_weights):
        wkw = {"pipeline_mode": pl.Buffered(1)} if single_buffer_weights else {}
        in_specs = [pl.BlockSpec((block_rows, d_in), lambda g: (g, 0))]
        for i in range(num_layers):
            in_specs.append(pl.BlockSpec((kdims[i], pout[i]),
                                         lambda g: (0, 0), **wkw))
            in_specs.append(pl.BlockSpec((1, pout[i]),
                                         lambda g: (0, 0), **wkw))
        out_specs = pl.BlockSpec((block_rows, pout[-1]), lambda g: (g, 0))
        return in_specs, out_specs

    flops = 2 * n_pad * sum(kdims[i] * pout[i] for i in range(num_layers))
    bytes_accessed = (x_p.size * x_isz
                      + sum(a.size * a.dtype.itemsize for a in flat)
                      + n_pad * pout[-1] * o_isz)
    cost = pl.CostEstimate(flops=flops,
                           transcendentals=(n_pad * num_layers) if has_l2norm else 0,
                           bytes_accessed=bytes_accessed)

    needed = 2 * weight_bytes + tile_bytes(block_rows)       # conservative
    vmem_limit = int(min(int(0.9 * vmem_cap),
                         max(needed + (8 << 20), 32 << 20)))
    cparams = pltpu.CompilerParams(
        dimension_semantics=("parallel",),                   # megacore / 2-TC
        vmem_limit_bytes=vmem_limit)

    def run(single_buffer_weights):
        in_specs, out_specs = build_specs(single_buffer_weights)
        fn = pl.pallas_call(
            kernel,
            out_shape=jax.ShapeDtypeStruct((n_pad, pout[-1]), out_dtype),
            grid=grid,
            in_specs=in_specs,
            out_specs=out_specs,
            compiler_params=cparams,
            cost_estimate=cost,
        )
        return fn(x_p, *flat)

    try:
        out_p = run(True)
    except Exception:
        # Fallback if this jax build rejects Buffered(1) on input specs.
        out_p = run(False)

    # Slice away row / lane padding.
    return out_p[:n, :dims[-1]]


def init_params(key, dim_in, dim_out, dim_inner, num_layers):
    """Deterministic parameter init mimicking nn.Linear default init.

    Returns list of (W, b) with W of shape (d_in, d_out) (transposed relative
    to PyTorch's (d_out, d_in) weight layout) and b of shape (1, d_out)."""
    params = []
    for i in range(num_layers):
        d_in = dim_in if i == 0 else dim_inner
        d_out = dim_out if i == num_layers - 1 else dim_inner
        key, kw, kb = jax.random.split(key, 3)
        bound = 1.0 / jnp.sqrt(jnp.float32(d_in))
        w = jax.random.uniform(kw, (d_in, d_out), jnp.float32, -bound, bound)
        b = jax.random.uniform(kb, (1, d_out), jnp.float32, -bound, bound)
        params.append((w, b))
    return params


def _reference(x, params, *, final_act=True, has_l2norm=True, eps=_EPS):
    """Pure-JAX reference matching the PyTorch module."""
    num_layers = len(params)
    for i, (w, b) in enumerate(params):
        has_act = final_act if i == num_layers - 1 else True
        y = x @ w + b
        if has_act:
            y = jnp.maximum(y, 0.0)
        if has_l2norm:
            norm = jnp.sqrt(jnp.sum(y * y, axis=1, keepdims=True))
            y = y / jnp.maximum(norm, eps)
        x = y
    return x


if __name__ == "__main__":
    key = jax.random.PRNGKey(0)
    # Small shapes consistent with the module defaults (num_layers=2,
    # dim_inner=None -> dim_in).
    N, DIM_IN, DIM_OUT, NUM_LAYERS = 8, 32, 16, 2
    DIM_INNER = DIM_IN

    kx, kp = jax.random.split(key)
    x = jax.random.normal(kx, (N, DIM_IN), jnp.float32)
    params = init_params(kp, DIM_IN, DIM_OUT, DIM_INNER, NUM_LAYERS)

    ref = _reference(x, params)

    # Default path: bf16 MXU inputs (bf16-native on v5e/v6e/v7x), f32 accumulate.
    out = jax.block_until_ready(general_multi_layer(x, params))
    assert out.shape == (N, DIM_OUT)
    assert jnp.allclose(out, ref, atol=3e-2, rtol=3e-2), "bf16 mismatch vs reference"

    # Opt-in exact f32 MXU path.
    out_f32 = jax.block_until_ready(
        general_multi_layer(x, params, matmul_dtype=jnp.float32))
    assert jnp.allclose(out_f32, ref, atol=1e-5, rtol=1e-5), "f32 mismatch vs reference"

    print("KERNEL_OK")
</pallas_src>

<mosaic_0001>
module attributes {stable_mosaic.version = 11 : i64} {
  func.func @_fused_mlp_kernel(%arg0: i32, %arg1: memref<8x32xbf16, #tpu.memory_space<vmem>>, %arg2: memref<32x128xbf16, #tpu.memory_space<vmem>>, %arg3: memref<1x128xf32, #tpu.memory_space<vmem>>, %arg4: memref<128x128xbf16, #tpu.memory_space<vmem>>, %arg5: memref<1x128xf32, #tpu.memory_space<vmem>>, %arg6: memref<8x128xf32, #tpu.memory_space<vmem>>) attributes {dimension_semantics = [#tpu.dimension_semantics<parallel>], iteration_bounds = array<i64: 1>, scalar_prefetch = 0 : i64, scratch_operands = 0 : i64, tpu.core_type = #tpu.core_type<tc>, window_params = [{transform_indices = @transform_0, window_bounds = array<i64: 8, 32>}, {pipeline_mode = #tpu.pipeline_mode<synchronous>, transform_indices = @transform_1, window_bounds = array<i64: 32, 128>}, {pipeline_mode = #tpu.pipeline_mode<synchronous>, transform_indices = @transform_2, window_bounds = array<i64: 1, 128>}, {pipeline_mode = #tpu.pipeline_mode<synchronous>, transform_indices = @transform_3, window_bounds = array<i64: 128, 128>}, {pipeline_mode = #tpu.pipeline_mode<synchronous>, transform_indices = @transform_4, window_bounds = array<i64: 1, 128>}, {transform_indices = @transform_5, window_bounds = array<i64: 8, 128>}]} {
    %c0 = arith.constant 0 : index
    %c0_0 = arith.constant 0 : index
    %0 = vector.load %arg1[%c0, %c0_0] : memref<8x32xbf16, #tpu.memory_space<vmem>>, vector<8x32xbf16>
    %c0_1 = arith.constant 0 : index
    %c0_2 = arith.constant 0 : index
    %1 = vector.load %arg2[%c0_1, %c0_2] : memref<32x128xbf16, #tpu.memory_space<vmem>>, vector<32x128xbf16>
    %c0_3 = arith.constant 0 : index
    %c0_4 = arith.constant 0 : index
    %2 = vector.load %arg3[%c0_3, %c0_4] : memref<1x128xf32, #tpu.memory_space<vmem>>, vector<1x128xf32>
    %cst = arith.constant dense<0.000000e+00> : vector<8x128xf32>
    %3 = tpu.matmul %0, %1, %cst {dimension_numbers = #tpu.dot_dimension_numbers<[1], [0], [0], [1], [0, 0, 1, 1], [], []>} : vector<8x32xbf16>, vector<32x128xbf16>, vector<8x128xf32> -> vector<8x128xf32>
    %4 = vector.broadcast %2 : vector<1x128xf32> to vector<8x128xf32>
    %5 = arith.addf %3, %4 : vector<8x128xf32>
    %cst_5 = arith.constant 0.000000e+00 : f32
    %6 = vector.broadcast %cst_5 : f32 to vector<8x128xf32>
    %7 = arith.maximumf %5, %6 : vector<8x128xf32>
    %8 = arith.mulf %7, %7 : vector<8x128xf32>
    %cst_6 = arith.constant dense<0.000000e+00> : vector<8xf32>
    %9 = vector.multi_reduction <add>, %8, %cst_6 [1] : vector<8x128xf32> to vector<8xf32>
    %10 = vector.shape_cast %9 : vector<8xf32> to vector<8x1xf32>
    %cst_7 = arith.constant 1.000000e-24 : f32
    %11 = vector.broadcast %cst_7 : f32 to vector<8x1xf32>
    %12 = arith.maximumf %10, %11 : vector<8x1xf32>
    %13 = math.rsqrt %12 : vector<8x1xf32>
    %14 = vector.broadcast %13 : vector<8x1xf32> to vector<8x128xf32>
    %15 = arith.mulf %7, %14 : vector<8x128xf32>
    %c0_8 = arith.constant 0 : index
    %c0_9 = arith.constant 0 : index
    %16 = vector.load %arg4[%c0_8, %c0_9] : memref<128x128xbf16, #tpu.memory_space<vmem>>, vector<128x128xbf16>
    %c0_10 = arith.constant 0 : index
    %c0_11 = arith.constant 0 : index
    %17 = vector.load %arg5[%c0_10, %c0_11] : memref<1x128xf32, #tpu.memory_space<vmem>>, vector<1x128xf32>
    %18 = arith.truncf %15 : vector<8x128xf32> to vector<8x128xbf16>
    %cst_12 = arith.constant dense<0.000000e+00> : vector<8x128xf32>
    %19 = tpu.matmul %18, %16, %cst_12 {dimension_numbers = #tpu.dot_dimension_numbers<[1], [0], [0], [1], [0, 0, 1, 1], [], []>} : vector<8x128xbf16>, vector<128x128xbf16>, vector<8x128xf32> -> vector<8x128xf32>
    %20 = vector.broadcast %17 : vector<1x128xf32> to vector<8x128xf32>
    %21 = arith.addf %19, %20 : vector<8x128xf32>
    %cst_13 = arith.constant 0.000000e+00 : f32
    %22 = vector.broadcast %cst_13 : f32 to vector<8x128xf32>
    %23 = arith.maximumf %21, %22 : vector<8x128xf32>
    %24 = arith.mulf %23, %23 : vector<8x128xf32>
    %cst_14 = arith.constant dense<0.000000e+00> : vector<8xf32>
    %25 = vector.multi_reduction <add>, %24, %cst_14 [1] : vector<8x128xf32> to vector<8xf32>
    %26 = vector.shape_cast %25 : vector<8xf32> to vector<8x1xf32>
    %cst_15 = arith.constant 1.000000e-24 : f32
    %27 = vector.broadcast %cst_15 : f32 to vector<8x1xf32>
    %28 = arith.maximumf %26, %27 : vector<8x1xf32>
    %29 = math.rsqrt %28 : vector<8x1xf32>
    %30 = vector.broadcast %29 : vector<8x1xf32> to vector<8x128xf32>
    %31 = arith.mulf %23, %30 : vector<8x128xf32>
    %c0_16 = arith.constant 0 : index
    %c0_17 = arith.constant 0 : index
    %32 = vector.load %arg6[%c0_16, %c0_17] : memref<8x128xf32, #tpu.memory_space<vmem>>, vector<8x128xf32>
    tpu.vector_store %arg6[%c0_16, %c0_17], %31 {strides = array<i32>} : memref<8x128xf32, #tpu.memory_space<vmem>>, vector<8x128xf32>,
    return
  }
  func.func @transform_0(%arg0: i32) -> (i32, i32) {
    %c0_i32 = arith.constant 0 : i32
    %c0_i32_0 = arith.constant 0 : i32
    return %arg0, %c0_i32 : i32, i32
  }
  func.func @transform_1(%arg0: i32) -> (i32, i32) {
    %c0_i32 = arith.constant 0 : i32
    %c0_i32_0 = arith.constant 0 : i32
    %c0_i32_1 = arith.constant 0 : i32
    return %c0_i32, %c0_i32_0 : i32, i32
  }
  func.func @transform_2(%arg0: i32) -> (i32, i32) {
    %c0_i32 = arith.constant 0 : i32
    %c0_i32_0 = arith.constant 0 : i32
    %c0_i32_1 = arith.constant 0 : i32
    return %c0_i32, %c0_i32_0 : i32, i32
  }
  func.func @transform_3(%arg0: i32) -> (i32, i32) {
    %c0_i32 = arith.constant 0 : i32
    %c0_i32_0 = arith.constant 0 : i32
    %c0_i32_1 = arith.constant 0 : i32
    return %c0_i32, %c0_i32_0 : i32, i32
  }
  func.func @transform_4(%arg0: i32) -> (i32, i32) {
    %c0_i32 = arith.constant 0 : i32
    %c0_i32_0 = arith.constant 0 : i32
    %c0_i32_1 = arith.constant 0 : i32
    return %c0_i32, %c0_i32_0 : i32, i32
  }
  func.func @transform_5(%arg0: i32) -> (i32, i32) {
    %c0_i32 = arith.constant 0 : i32
    %c0_i32_0 = arith.constant 0 : i32
    return %arg0, %c0_i32 : i32, i32
  }
}

module attributes {stable_mosaic.version = 11 : i64} {
  func.func @_fused_mlp_kernel(%arg0: i32, %arg1: memref<8x32xbf16, #tpu.memory_space<vmem>>, %arg2: memref<32x128xbf16, #tpu.memory_space<vmem>>, %arg3: memref<1x128xf32, #tpu.memory_space<vmem>>, %arg4: memref<128x128xbf16, #tpu.memory_space<vmem>>, %arg5: memref<1x128xf32, #tpu.memory_space<vmem>>, %arg6: memref<8x128xf32, #tpu.memory_space<vmem>>) attributes {dimension_semantics = [#tpu.dimension_semantics<parallel>], iteration_bounds = array<i64: 1>, scalar_prefetch = 0 : i64, scratch_operands = 0 : i64, tpu.core_type = #tpu.core_type<tc>, window_params = [{transform_indices = @transform_0, window_bounds = array<i64: 8, 32>}, {pipeline_mode = #tpu.pipeline_mode<synchronous>, transform_indices = @transform_1, window_bounds = array<i64: 32, 128>}, {pipeline_mode = #tpu.pipeline_mode<synchronous>, transform_indices = @transform_2, window_bounds = array<i64: 1, 128>}, {pipeline_mode = #tpu.pipeline_mode<synchronous>, transform_indices = @transform_3, window_bounds = array<i64: 128, 128>}, {pipeline_mode = #tpu.pipeline_mode<synchronous>, transform_indices = @transform_4, window_bounds = array<i64: 1, 128>}, {transform_indices = @transform_5, window_bounds = array<i64: 8, 128>}]} {
    %c0 = arith.constant 0 : index
    %c0_0 = arith.constant 0 : index
    %0 = vector.load %arg1[%c0, %c0_0] : memref<8x32xbf16, #tpu.memory_space<vmem>>, vector<8x32xbf16>
    %c0_1 = arith.constant 0 : index
    %c0_2 = arith.constant 0 : index
    %1 = vector.load %arg2[%c0_1, %c0_2] : memref<32x128xbf16, #tpu.memory_space<vmem>>, vector<32x128xbf16>
    %c0_3 = arith.constant 0 : index
    %c0_4 = arith.constant 0 : index
    %2 = vector.load %arg3[%c0_3, %c0_4] : memref<1x128xf32, #tpu.memory_space<vmem>>, vector<1x128xf32>
    %cst = arith.constant dense<0.000000e+00> : vector<8x128xf32>
    %3 = tpu.matmul %0, %1, %cst {dimension_numbers = #tpu.dot_dimension_numbers<[1], [0], [0], [1], [0, 0, 1, 1], [], []>} : vector<8x32xbf16>, vector<32x128xbf16>, vector<8x128xf32> -> vector<8x128xf32>
    %4 = vector.broadcast %2 : vector<1x128xf32> to vector<8x128xf32>
    %5 = arith.addf %3, %4 : vector<8x128xf32>
    %cst_5 = arith.constant 0.000000e+00 : f32
    %6 = vector.broadcast %cst_5 : f32 to vector<8x128xf32>
    %7 = arith.maximumf %5, %6 : vector<8x128xf32>
    %8 = arith.mulf %7, %7 : vector<8x128xf32>
    %cst_6 = arith.constant dense<0.000000e+00> : vector<8xf32>
    %9 = vector.multi_reduction <add>, %8, %cst_6 [1] : vector<8x128xf32> to vector<8xf32>
    %10 = vector.shape_cast %9 : vector<8xf32> to vector<8x1xf32>
    %cst_7 = arith.constant 1.000000e-24 : f32
    %11 = vector.broadcast %cst_7 : f32 to vector<8x1xf32>
    %12 = arith.maximumf %10, %11 : vector<8x1xf32>
    %13 = math.rsqrt %12 : vector<8x1xf32>
    %14 = vector.broadcast %13 : vector<8x1xf32> to vector<8x128xf32>
    %15 = arith.mulf %7, %14 : vector<8x128xf32>
    %c0_8 = arith.constant 0 : index
    %c0_9 = arith.constant 0 : index
    %16 = vector.load %arg4[%c0_8, %c0_9] : memref<128x128xbf16, #tpu.memory_space<vmem>>, vector<128x128xbf16>
    %c0_10 = arith.constant 0 : index
    %c0_11 = arith.constant 0 : index
    %17 = vector.load %arg5[%c0_10, %c0_11] : memref<1x128xf32, #tpu.memory_space<vmem>>, vector<1x128xf32>
    %18 = arith.truncf %15 : vector<8x128xf32> to vector<8x128xbf16>
    %cst_12 = arith.constant dense<0.000000e+00> : vector<8x128xf32>
    %19 = tpu.matmul %18, %16, %cst_12 {dimension_numbers = #tpu.dot_dimension_numbers<[1], [0], [0], [1], [0, 0, 1, 1], [], []>} : vector<8x128xbf16>, vector<128x128xbf16>, vector<8x128xf32> -> vector<8x128xf32>
    %20 = vector.broadcast %17 : vector<1x128xf32> to vector<8x128xf32>
    %21 = arith.addf %19, %20 : vector<8x128xf32>
    %cst_13 = arith.constant 0.000000e+00 : f32
    %22 = vector.broadcast %cst_13 : f32 to vector<8x128xf32>
    %23 = arith.maximumf %21, %22 : vector<8x128xf32>
    %24 = arith.mulf %23, %23 : vector<8x128xf32>
    %cst_14 = arith.constant dense<0.000000e+00> : vector<8xf32>
    %25 = vector.multi_reduction <add>, %24, %cst_14 [1] : vector<8x128xf32> to vector<8xf32>
    %26 = vector.shape_cast %25 : vector<8xf32> to vector<8x1xf32>
    %cst_15 = arith.constant 1.000000e-24 : f32
    %27 = vector.broadcast %cst_15 : f32 to vector<8x1xf32>
    %28 = arith.maximumf %26, %27 : vector<8x1xf32>
    %29 = math.rsqrt %28 : vector<8x1xf32>
    %30 = vector.broadcast %29 : vector<8x1xf32> to vector<8x128xf32>
    %31 = arith.mulf %23, %30 : vector<8x128xf32>
    %c0_16 = arith.constant 0 : index
    %c0_17 = arith.constant 0 : index
    %32 = vector.load %arg6[%c0_16, %c0_17] : memref<8x128xf32, #tpu.memory_space<vmem>>, vector<8x128xf32>
    tpu.vector_store %arg6[%c0_16, %c0_17], %31 {strides = array<i32>} : memref<8x128xf32, #tpu.memory_space<vmem>>, vector<8x128xf32>,
    return
  }
  func.func @transform_0(%arg0: i32) -> (i32, i32) {
    %c0_i32 = arith.constant 0 : i32
    %c0_i32_0 = arith.constant 0 : i32
    return %arg0, %c0_i32 : i32, i32
  }
  func.func @transform_1(%arg0: i32) -> (i32, i32) {
    %c0_i32 = arith.constant 0 : i32
    %c0_i32_0 = arith.constant 0 : i32
    %c0_i32_1 = arith.constant 0 : i32
    return %c0_i32, %c0_i32_0 : i32, i32
  }
  func.func @transform_2(%arg0: i32) -> (i32, i32) {
    %c0_i32 = arith.constant 0 : i32
    %c0_i32_0 = arith.constant 0 : i32
    %c0_i32_1 = arith.constant 0 : i32
    return %c0_i32, %c0_i32_0 : i32, i32
  }
  func.func @transform_3(%arg0: i32) -> (i32, i32) {
    %c0_i32 = arith.constant 0 : i32
    %c0_i32_0 = arith.constant 0 : i32
    %c0_i32_1 = arith.constant 0 : i32
    return %c0_i32, %c0_i32_0 : i32, i32
  }
  func.func @transform_4(%arg0: i32) -> (i32, i32) {
    %c0_i32 = arith.constant 0 : i32
    %c0_i32_0 = arith.constant 0 : i32
    %c0_i32_1 = arith.constant 0 : i32
    return %c0_i32, %c0_i32_0 : i32, i32
  }
  func.func @transform_5(%arg0: i32) -> (i32, i32) {
    %c0_i32 = arith.constant 0 : i32
    %c0_i32_0 = arith.constant 0 : i32
    return %arg0, %c0_i32 : i32, i32
  }
}

</mosaic_0001>

<bundles_post_ra>
// kernel: tpu_custom_call.1
= control target key start
LH: loop header
LB: loop body
LE: loop exit
PB: predicated region body
PF: predicated region fallthrough
CT: control target
= control target key end

     0   :  { %10 = vsyncpa [#allocation3], 0  ;;  %s457_s0 = inlined_call_operand.hbm [shape: bf16[8,32], index: 0, kind: input, shape index: {}]   ;;  %s458_s1 = inlined_call_operand.hbm [shape: bf16[32,128], index: 1, kind: input, shape index: {}]   ;;  %s459_s2 = inlined_call_operand.vmem [shape: f32[1,128], index: 2, kind: input, shape index: {}]   ;;  %s460_s3 = inlined_call_operand.hbm [shape: bf16[128,128], index: 3, kind: input, shape index: {}]   ;;  %s461_s4 = inlined_call_operand.vmem [shape: f32[1,128], index: 4, kind: input, shape index: {}]   ;;  %s462_s5 = inlined_call_operand.hbm [shape: f32[8,128], index: 5, kind: output, shape index: {}]  }
   0x1   :  { %11 = vsyncpa [#allocation6], 0  ;;  %s28_s20 = sshll.u32 %s458_s1, 4  ;;  %s29_s20 = int_to_ptr.hbm [resolvable:$true] %s28_s20 }
   0x2   :  { %12 = vsyncpa [#allocation4], 0  ;;  %s403_s21 = smov [#allocation5]   ;;  %s18_s25 = sshll.u32 %s457_s0, 4  ;;  %s19_s25 = int_to_ptr.hbm [resolvable:$true] %s18_s25 }
   0x3   :  { %s30_s22 = sshll.u32 %s403_s21, 4  ;;  %s404_s26 = smov 64   ;;  %s31_s22 = int_to_ptr.vmem [resolvable:$true] %s30_s22 }
   0x4   :  { %s405_s27 = smov 4   ;;  %s406_s28 = smov [#allocation2]  }
   0x5   :  { %36 = dma.hbm_to_vmem [thread:$0]  %s29_s20, 256, %s31_s22, [#allocation6], %s404_s26, %s404_s26, %s405_s27  }
   0x6   :  { %s20_s29 = sshll.u32 %s406_s28, 4  ;;  %s43_s7 = sshll.u32 %s460_s3, 4  ;;  %s21_s29 = int_to_ptr.vmem [resolvable:$true] %s20_s29  ;;  %s44_s7 = int_to_ptr.hbm [resolvable:$true] %s43_s7 }
   0x7   :  { %23 = dma.hbm_to_vmem [thread:$0]  %s19_s25, 64, %s21_s29, [#allocation3]  }
   0x8   :  { %s407_s1 = smov [#allocation7]  }
   0x9   :  { %s45_s8 = sshll.u32 %s407_s1, 4  ;;  %s46_s8 = int_to_ptr.vmem [resolvable:$true] %s45_s8 }
   0xa   :  { %51 = dma.hbm_to_vmem [thread:$0]  %s44_s7, 1024, %s46_s8, [#allocation6], %s404_s26, %s404_s26, %s405_s27  }
   0xb   :  { %397 = dma.done.wait [#allocation3], 64  }
   0xc   :  { %398 = vsyncadd [#allocation3], 4294967232 }
   0xd   :  { %399 = dma.done.wait [#allocation6], 1280  }
   0xe   :  { %400 = vsyncadd [#allocation6], 4294966016  ;;  %v280_v0 = vld [vmem:[#allocation5 + $0x8] sm:$0xff]  ;;  %v279_v1 = vld [vmem:[#allocation5] sm:$0xff]  ;;  %vm88_vm0 = vcmask 261120   ;;  %s408_s10 = smov [#allocation8]  }
   0xf   :  { %98 = vmatpush.bf16.msra.mxu0 %v280_v0  ;;  %v67_v2 = vld [vmem:[#allocation2] sm:$0xf]  ;;  %v288_v3 = vld [vmem:[#allocation7 + $0x38] sm:$0xff]  ;;  %v287_v4 = vld [vmem:[#allocation7 + $0x30] sm:$0xff]  ;;  %s225_s11 = sshll.u32 %s408_s10, 4  ;;  %s227_s13 = sshll.u32 %s462_s5, 4  ;;  %s226_s11 = int_to_ptr.vmem [resolvable:$true] %s225_s11  ;;  %s228_s13 = int_to_ptr.hbm [resolvable:$true] %s227_s13 }
  0x10   :  { %190 = vmatpush.bf16.msra.mxu1 %v288_v3  ;;  %v295_v5 = vld [vmem:[%s459_s2] ss:$0 sm:$0xff]  ;;  %v285_v12 = vld [vmem:[#allocation7 + $0x20] sm:$0xff]  ;;  %v284_v13 = vld [vmem:[#allocation7 + $0x18] sm:$0xff] }
  0x11   :  { %v286_v11 = vld [vmem:[#allocation7 + $0x28] sm:$0xff]  ;;  %v283_v14 = vld [vmem:[#allocation7 + $0x10] sm:$0xff]  ;;  %v281_v16 = vld [vmem:[#allocation7] sm:$0xff] }
  0x12   :  { %v282_v15 = vld [vmem:[#allocation7 + $0x8] sm:$0xff] }
  0x13   :  { %99 = vmatpush.bf16.msra.mxu0 %v279_v1  ;;  %v296_v28 = vld [vmem:[%s461_s4] ss:$0 sm:$0xff] }
  0x14   :  { %191 = vmatpush.bf16.msra.mxu1 %v287_v4 }
  0x16   :  { %246 = vmatmul.msk.bf16.vlgmr.msra.gmra.mxu0 %vm88_vm0, %v67_v2 }
  0x18   :  { %192 = vmatpush.bf16.msra.mxu1 %v286_v11 }
  0x1c   :  { %193 = vmatpush.bf16.msra.mxu1 %v285_v12 }
  0x20   :  { %194 = vmatpush.bf16.msra.mxu1 %v284_v13 }
  0x24   :  { %195 = vmatpush.bf16.msra.mxu1 %v283_v14 }
  0x28   :  { %196 = vmatpush.bf16.msra.mxu1 %v282_v15 }
  0x2c   :  { %197 = vmatpush.bf16.msra.mxu1 %v281_v16 }
  0x93   :  { %v101_v6 = vpop.f32.mrf.mxu0 }
  0x94   :  { %v102_v7 = vadd.f32 %v295_v5, %v101_v6 }
  0x96   :  { %v105_v8 = vmax.f32 %v102_v7, 0.0 }
  0x98   :  { %v106_v9 = vmul.f32 %v105_v8, %v105_v8 }
  0x9a   :  { %107 = vadd.xlane.f32.xlu0 %v106_v9 }
  0x9b   :  { %v103_v10 = vpop.f32.mrf.mxu0 }
 0x10d   :  { %v108_v17 = vpop.xlane.xlu0 %107 }
 0x10e   :  { %v109_v18 = vmax.f32 %v108_v17, 1e-24 }
 0x110   :  { %297 = vrsqrt.f32 %v109_v18  ;;  %vm116_vm2 = vweird.f32 %v109_v18 }
 0x116   :  { %v298_v19 = vpop.eup %297 }
 0x117   :  { %v111_v20 = vmul.f32 %v298_v19, %v109_v18  ;;  %vm117_vm1 = vweird.f32 %v298_v19 }
 0x118   :  { %vm118_vm3 = vmor %vm116_vm2, %vm117_vm1 }
 0x119   :  { %v112_v21 = vmul.f32 %v298_v19, %v111_v20 }
 0x11b   :  { %v113_v22 = vmul.f32 0.5, %v112_v21 }
 0x11d   :  { %v114_v23 = vsub.f32 1.5, %v113_v22 }
 0x11f   :  { %v115_v24 = vmul.f32 %v298_v19, %v114_v23 }
 0x121   :  { %v119_v25 = vsel %vm118_vm3, %v298_v19, %v115_v24 }
 0x122   :  { %v120_v26 = vmul.f32 %v119_v25, %v105_v8 }
 0x124   :  { %v138_v27 = vpack.c.bf16 %v120_v26, %v120_v26 }
 0x126   :  { %198 = vmatmul.bf16.vlgmr.msra.gmra.mxu1 %v138_v27 }
 0x1a3   :  { %v199_v29 = vpop.f32.mrf.mxu1 }
 0x1a4   :  { %v200_v30 = vadd.f32 %v296_v28, %v199_v29 }
 0x1a6   :  { %v203_v31 = vmax.f32 %v200_v30, 0.0 }
 0x1a8   :  { %v204_v32 = vmul.f32 %v203_v31, %v203_v31 }
 0x1aa   :  { %205 = vadd.xlane.f32.xlu0 %v204_v32 }
 0x1ab   :  { %v201_v33 = vpop.f32.mrf.mxu1 }
 0x21d   :  { %v206_v34 = vpop.xlane.xlu0 %205 }
 0x21e   :  { %v207_v35 = vmax.f32 %v206_v34, 1e-24 }
 0x220   :  { %299 = vrsqrt.f32 %v207_v35  ;;  %vm214_vm5 = vweird.f32 %v207_v35 }
 0x226   :  { %v300_v36 = vpop.eup %299 }
 0x227   :  { %v209_v37 = vmul.f32 %v300_v36, %v207_v35  ;;  %vm215_vm4 = vweird.f32 %v300_v36 }
 0x228   :  { %vm216_vm6 = vmor %vm214_vm5, %vm215_vm4 }
 0x229   :  { %v210_v38 = vmul.f32 %v300_v36, %v209_v37 }
 0x22b   :  { %v211_v39 = vmul.f32 0.5, %v210_v38 }
 0x22d   :  { %v212_v40 = vsub.f32 1.5, %v211_v39 }
 0x22f   :  { %v213_v41 = vmul.f32 %v300_v36, %v212_v40 }
 0x231   :  { %v217_v42 = vsel %vm216_vm6, %v300_v36, %v213_v41 }
 0x232   :  { %v218_v43 = vmul.f32 %v217_v42, %v203_v31 }
 0x234   :  { %219 = vst [vmem:[#allocation8] sm:$0xff] %v218_v43 }
 0x235   :  { %230 = dma.vmem_to_hbm [thread:$0]  %s226_s11, 128, %s228_s13, [#allocation4]  }
 0x236   :  { %401 = dma.done.wait [#allocation4], 128  }
 0x237   :  { %402 = vsyncadd [#allocation4], 4294967168 }
 0x238   :  { %235 = vsyncpa [#allocation3], 1 }
 0x239   :  { %236 = vsyncpa [#allocation6], 1 }
 0x23a   :  { %237 = vsyncpa [#allocation4], 1 }

// kernel: tpu_custom_call.1
= control target key start
LH: loop header
LB: loop body
LE: loop exit
PB: predicated region body
PF: predicated region fallthrough
CT: control target
= control target key end

     0   :  { %10 = vsyncpa [#allocation3], 0  ;;  %s457_s0 = inlined_call_operand.hbm [shape: bf16[8,32], index: 0, kind: input, shape index: {}]   ;;  %s458_s1 = inlined_call_operand.hbm [shape: bf16[32,128], index: 1, kind: input, shape index: {}]   ;;  %s459_s2 = inlined_call_operand.vmem [shape: f32[1,128], index: 2, kind: input, shape index: {}]   ;;  %s460_s3 = inlined_call_operand.hbm [shape: bf16[128,128], index: 3, kind: input, shape index: {}]   ;;  %s461_s4 = inlined_call_operand.vmem [shape: f32[1,128], index: 4, kind: input, shape index: {}]   ;;  %s462_s5 = inlined_call_operand.hbm [shape: f32[8,128], index: 5, kind: output, shape index: {}]  }
   0x1   :  { %11 = vsyncpa [#allocation6], 0  ;;  %s28_s20 = sshll.u32 %s458_s1, 4  ;;  %s29_s20 = int_to_ptr.hbm [resolvable:$true] %s28_s20 }
   0x2   :  { %12 = vsyncpa [#allocation4], 0  ;;  %s403_s21 = smov [#allocation5]   ;;  %s18_s25 = sshll.u32 %s457_s0, 4  ;;  %s19_s25 = int_to_ptr.hbm [resolvable:$true] %s18_s25 }
   0x3   :  { %s30_s22 = sshll.u32 %s403_s21, 4  ;;  %s404_s26 = smov 64   ;;  %s31_s22 = int_to_ptr.vmem [resolvable:$true] %s30_s22 }
   0x4   :  { %s405_s27 = smov 4   ;;  %s406_s28 = smov [#allocation2]  }
   0x5   :  { %36 = dma.hbm_to_vmem [thread:$0]  %s29_s20, 256, %s31_s22, [#allocation6], %s404_s26, %s404_s26, %s405_s27  }
   0x6   :  { %s20_s29 = sshll.u32 %s406_s28, 4  ;;  %s43_s7 = sshll.u32 %s460_s3, 4  ;;  %s21_s29 = int_to_ptr.vmem [resolvable:$true] %s20_s29  ;;  %s44_s7 = int_to_ptr.hbm [resolvable:$true] %s43_s7 }
   0x7   :  { %23 = dma.hbm_to_vmem [thread:$0]  %s19_s25, 64, %s21_s29, [#allocation3]  }
   0x8   :  { %s407_s1 = smov [#allocation7]  }
   0x9   :  { %s45_s8 = sshll.u32 %s407_s1, 4  ;;  %s46_s8 = int_to_ptr.vmem [resolvable:$true] %s45_s8 }
   0xa   :  { %51 = dma.hbm_to_vmem [thread:$0]  %s44_s7, 1024, %s46_s8, [#allocation6], %s404_s26, %s404_s26, %s405_s27  }
   0xb   :  { %397 = dma.done.wait [#allocation3], 64  }
   0xc   :  { %398 = vsyncadd [#allocation3], 4294967232 }
   0xd   :  { %399 = dma.done.wait [#allocation6], 1280  }
   0xe   :  { %400 = vsyncadd [#allocation6], 4294966016  ;;  %v280_v0 = vld [vmem:[#allocation5 + $0x8] sm:$0xff]  ;;  %v279_v1 = vld [vmem:[#allocation5] sm:$0xff]  ;;  %vm88_vm0 = vcmask 261120   ;;  %s408_s10 = smov [#allocation8]  }
   0xf   :  { %98 = vmatpush.bf16.msra.mxu0 %v280_v0  ;;  %v67_v2 = vld [vmem:[#allocation2] sm:$0xf]  ;;  %v288_v3 = vld [vmem:[#allocation7 + $0x38] sm:$0xff]  ;;  %v287_v4 = vld [vmem:[#allocation7 + $0x30] sm:$0xff]  ;;  %s225_s11 = sshll.u32 %s408_s10, 4  ;;  %s227_s13 = sshll.u32 %s462_s5, 4  ;;  %s226_s11 = int_to_ptr.vmem [resolvable:$true] %s225_s11  ;;  %s228_s13 = int_to_ptr.hbm [resolvable:$true] %s227_s13 }
  0x10   :  { %190 = vmatpush.bf16.msra.mxu1 %v288_v3  ;;  %v295_v5 = vld [vmem:[%s459_s2] ss:$0 sm:$0xff]  ;;  %v285_v12 = vld [vmem:[#allocation7 + $0x20] sm:$0xff]  ;;  %v284_v13 = vld [vmem:[#allocation7 + $0x18] sm:$0xff] }
  0x11   :  { %v286_v11 = vld [vmem:[#allocation7 + $0x28] sm:$0xff]  ;;  %v283_v14 = vld [vmem:[#allocation7 + $0x10] sm:$0xff]  ;;  %v281_v16 = vld [vmem:[#allocation7] sm:$0xff] }
  0x12   :  { %v282_v15 = vld [vmem:[#allocation7 + $0x8] sm:$0xff] }
  0x13   :  { %99 = vmatpush.bf16.msra.mxu0 %v279_v1  ;;  %v296_v28 = vld [vmem:[%s461_s4] ss:$0 sm:$0xff] }
  0x14   :  { %191 = vmatpush.bf16.msra.mxu1 %v287_v4 }
  0x16   :  { %246 = vmatmul.msk.bf16.vlgmr.msra.gmra.mxu0 %vm88_vm0, %v67_v2 }
  0x18   :  { %192 = vmatpush.bf16.msra.mxu1 %v286_v11 }
  0x1c   :  { %193 = vmatpush.bf16.msra.mxu1 %v285_v12 }
  0x20   :  { %194 = vmatpush.bf16.msra.mxu1 %v284_v13 }
  0x24   :  { %195 = vmatpush.bf16.msra.mxu1 %v283_v14 }
  0x28   :  { %196 = vmatpush.bf16.msra.mxu1 %v282_v15 }
  0x2c   :  { %197 = vmatpush.bf16.msra.mxu1 %v281_v16 }
  0x93   :  { %v101_v6 = vpop.f32.mrf.mxu0 }
  0x94   :  { %v102_v7 = vadd.f32 %v295_v5, %v101_v6 }
  0x96   :  { %v105_v8 = vmax.f32 %v102_v7, 0.0 }
  0x98   :  { %v106_v9 = vmul.f32 %v105_v8, %v105_v8 }
  0x9a   :  { %107 = vadd.xlane.f32.xlu0 %v106_v9 }
  0x9b   :  { %v103_v10 = vpop.f32.mrf.mxu0 }
 0x10d   :  { %v108_v17 = vpop.xlane.xlu0 %107 }
 0x10e   :  { %v109_v18 = vmax.f32 %v108_v17, 1e-24 }
 0x110   :  { %297 = vrsqrt.f32 %v109_v18  ;;  %vm116_vm2 = vweird.f32 %v109_v18 }
 0x116   :  { %v298_v19 = vpop.eup %297 }
 0x117   :  { %v111_v20 = vmul.f32 %v298_v19, %v109_v18  ;;  %vm117_vm1 = vweird.f32 %v298_v19 }
 0x118   :  { %vm118_vm3 = vmor %vm116_vm2, %vm117_vm1 }
 0x119   :  { %v112_v21 = vmul.f32 %v298_v19, %v111_v20 }
 0x11b   :  { %v113_v22 = vmul.f32 0.5, %v112_v21 }
 0x11d   :  { %v114_v23 = vsub.f32 1.5, %v113_v22 }
 0x11f   :  { %v115_v24 = vmul.f32 %v298_v19, %v114_v23 }
 0x121   :  { %v119_v25 = vsel %vm118_vm3, %v298_v19, %v115_v24 }
 0x122   :  { %v120_v26 = vmul.f32 %v119_v25, %v105_v8 }
 0x124   :  { %v138_v27 = vpack.c.bf16 %v120_v26, %v120_v26 }
 0x126   :  { %198 = vmatmul.bf16.vlgmr.msra.gmra.mxu1 %v138_v27 }
 0x1a3   :  { %v199_v29 = vpop.f32.mrf.mxu1 }
 0x1a4   :  { %v200_v30 = vadd.f32 %v296_v28, %v199_v29 }
 0x1a6   :  { %v203_v31 = vmax.f32 %v200_v30, 0.0 }
 0x1a8   :  { %v204_v32 = vmul.f32 %v203_v31, %v203_v31 }
 0x1aa   :  { %205 = vadd.xlane.f32.xlu0 %v204_v32 }
 0x1ab   :  { %v201_v33 = vpop.f32.mrf.mxu1 }
 0x21d   :  { %v206_v34 = vpop.xlane.xlu0 %205 }
 0x21e   :  { %v207_v35 = vmax.f32 %v206_v34, 1e-24 }
 0x220   :  { %299 = vrsqrt.f32 %v207_v35  ;;  %vm214_vm5 = vweird.f32 %v207_v35 }
 0x226   :  { %v300_v36 = vpop.eup %299 }
 0x227   :  { %v209_v37 = vmul.f32 %v300_v36, %v207_v35  ;;  %vm215_vm4 = vweird.f32 %v300_v36 }
 0x228   :  { %vm216_vm6 = vmor %vm214_vm5, %vm215_vm4 }
 0x229   :  { %v210_v38 = vmul.f32 %v300_v36, %v209_v37 }
 0x22b   :  { %v211_v39 = vmul.f32 0.5, %v210_v38 }
 0x22d   :  { %v212_v40 = vsub.f32 1.5, %v211_v39 }
 0x22f   :  { %v213_v41 = vmul.f32 %v300_v36, %v212_v40 }
 0x231   :  { %v217_v42 = vsel %vm216_vm6, %v300_v36, %v213_v41 }
 0x232   :  { %v218_v43 = vmul.f32 %v217_v42, %v203_v31 }
 0x234   :  { %219 = vst [vmem:[#allocation8] sm:$0xff] %v218_v43 }
 0x235   :  { %230 = dma.vmem_to_hbm [thread:$0]  %s226_s11, 128, %s228_s13, [#allocation4]  }
 0x236   :  { %401 = dma.done.wait [#allocation4], 128  }
 0x237   :  { %402 = vsyncadd [#allocation4], 4294967168 }
 0x238   :  { %235 = vsyncpa [#allocation3], 1 }
 0x239   :  { %236 = vsyncpa [#allocation6], 1 }
 0x23a   :  { %237 = vsyncpa [#allocation4], 1 }

</bundles_post_ra>
